<compile_context>
chip_gen: v6e
topology: v6e:2x2x1
jax: 0.10.0
libtpu: 0.0.40
codegen_flags: <defaults>
</compile_context>

<pallas_src>
import functools

import jax
import jax.numpy as jnp
from jax.experimental import pallas as pl
from jax.experimental.pallas import tpu as pltpu


def _layernorm_residual_kernel(x_ref, res_ref, w_ref, b_ref, o_ref, *, eps, hidden):
    x = x_ref[...].astype(jnp.float32)        # (row_tile, H)
    res = res_ref[...].astype(jnp.float32)
    w = w_ref[...]                            # (1, H), pre-cast to f32 in the wrapper
    b = b_ref[...]

    # Two-pass mean/variance: numerically robust (no E[x^2]-mean^2 cancellation).
    # The extra XLU reduction sweep is hidden under HBM time on v5e/v6e.
    # TODO(synk): on v7x, if the XLU slot binds, offload the row sums to the idle MXU
    # via jnp.dot(x, ones[H,1]) instead.
    mean = jnp.sum(x, axis=-1, keepdims=True) * (1.0 / hidden)
    centered = x - mean
    sq_sum = jnp.sum(centered * centered, axis=-1, keepdims=True)

    # torch.std default is the unbiased estimator (ddof=1); eps is added to std.
    ddof_den = hidden - 1 if hidden > 1 else 1   # guard degenerate H == 1
    var = sq_sum * (1.0 / ddof_den)
    inv_std = 1.0 / (jnp.sqrt(var) + eps)        # exact; sqrt/recip ride the EUP slot

    out = centered * inv_std * w + b + res
    o_ref[...] = out.astype(o_ref.dtype)


def layernorm_residual(x, residual, weight, bias, eps=1e-5, row_tile=None,
                       target_block_bytes=2 << 20):
    """x, residual: (..., H); weight, bias: (H,). Returns same shape/dtype as x."""
    orig_shape = x.shape
    H = orig_shape[-1]
    N = 1
    for d in orig_shape[:-1]:
        N *= d

    # Only leading dims are merged: the (sublane, lane) layout of the trailing dims is
    # untouched, so these reshapes introduce no HBM relayout pass.
    x2 = x.reshape(N, H)
    r2 = residual.reshape(N, H)

    itemsize = jnp.dtype(x.dtype).itemsize
    sublane = {4: 8, 2: 16, 1: 32}.get(itemsize, 8)

    # Size the row tile against the *lane-padded* footprint of one block (a narrow H
    # still occupies full 128-lane tiles in VMEM).
    lane_padded_row_bytes = max(((H + 127) // 128) * 128, 128) * itemsize
    if row_tile is None:
        row_tile = target_block_bytes // lane_padded_row_bytes
    row_tile = max(sublane, (row_tile // sublane) * sublane)
    if row_tile >= N:
        row_tile = N                      # one block over rows; full-dim is always legal

    # Partial last block when N % row_tile != 0: tail rows are read as garbage but all
    # math is per-row, and their stores are masked off. No jnp.pad / slice passes.
    grid = (pl.cdiv(N, row_tile),)

    # Pre-cast params to f32 once (tiny) so the body doesn't re-emit converts each step.
    w2 = weight.astype(jnp.float32).reshape(1, H)
    b2 = bias.astype(jnp.float32).reshape(1, H)

    kernel = functools.partial(_layernorm_residual_kernel, eps=float(eps), hidden=H)

    # Bandwidth-bound: 2 reads + 1 write of N*H elements dominate.
    cost = pl.CostEstimate(
        flops=8 * N * H,
        transcendentals=N,
        bytes_accessed=3 * N * H * itemsize + 2 * H * 4,
    )

    out = pl.pallas_call(
        kernel,
        out_shape=jax.ShapeDtypeStruct((N, H), x.dtype),
        grid_spec=pltpu.PrefetchScalarGridSpec(
            num_scalar_prefetch=0,
            grid=grid,
            in_specs=[
                pl.BlockSpec((row_tile, H), lambda i: (i, 0)),
                pl.BlockSpec((row_tile, H), lambda i: (i, 0)),
                pl.BlockSpec((1, H), lambda i: (0, 0)),   # weight: resident across steps
                pl.BlockSpec((1, H), lambda i: (0, 0)),   # bias:   resident across steps
            ],
            out_specs=pl.BlockSpec((row_tile, H), lambda i: (i, 0)),
        ),
        compiler_params=pltpu.CompilerParams(
            # Row axis is embarrassingly parallel.
            # TODO(synk): on v7x, if a profile shows one idle TensorCore, switch this
            # axis to pltpu.CORE_PARALLEL.
            dimension_semantics=("parallel",),
            vmem_limit_bytes=48 << 20,    # above v5e/v6e scoped defaults, < v7x 64 MiB
        ),
        cost_estimate=cost,
    )(x2, r2, w2, b2)

    return out.reshape(orig_shape)


if __name__ == "__main__":
    batch, seq, hidden = 2, 8, 32
    key = jax.random.PRNGKey(0)
    kx, kr = jax.random.split(key)
    x = jax.random.normal(kx, (batch, seq, hidden), dtype=jnp.float32)
    residual = jax.random.normal(kr, (batch, seq, hidden), dtype=jnp.float32)

    # reset_parameters(): ones / zeros
    weight = jnp.ones((hidden,), dtype=jnp.float32)
    bias = jnp.zeros((hidden,), dtype=jnp.float32)

    out = layernorm_residual(x, residual, weight, bias, eps=1e-5)
    out = jax.block_until_ready(out)

    # Plain-JAX reference mirroring torch semantics (unbiased std, eps on std).
    mean = jnp.mean(x, axis=-1, keepdims=True)
    std = jnp.std(x, axis=-1, keepdims=True, ddof=1)
    ref = (x - mean) / (std + 1e-5) * weight + bias + residual

    assert out.shape == ref.shape and out.dtype == ref.dtype
    assert jnp.allclose(out, ref, atol=1e-4, rtol=1e-4), "mismatch vs reference"

    print("KERNEL_OK")
</pallas_src>

<mosaic_0001>
module attributes {stable_mosaic.version = 11 : i64} {
  func.func @_layernorm_residual_kernel(%arg0: i32, %arg1: memref<16x32xf32, #tpu.memory_space<vmem>>, %arg2: memref<16x32xf32, #tpu.memory_space<vmem>>, %arg3: memref<1x32xf32, #tpu.memory_space<vmem>>, %arg4: memref<1x32xf32, #tpu.memory_space<vmem>>, %arg5: memref<16x32xf32, #tpu.memory_space<vmem>>) attributes {dimension_semantics = [#tpu.dimension_semantics<parallel>], iteration_bounds = array<i64: 1>, scalar_prefetch = 0 : i64, scratch_operands = 0 : i64, tpu.core_type = #tpu.core_type<tc>, window_params = [{transform_indices = @transform_0, window_bounds = array<i64: 16, 32>}, {transform_indices = @transform_1, window_bounds = array<i64: 16, 32>}, {pipeline_mode = #tpu.pipeline_mode<synchronous>, transform_indices = @transform_2, window_bounds = array<i64: 1, 32>}, {pipeline_mode = #tpu.pipeline_mode<synchronous>, transform_indices = @transform_3, window_bounds = array<i64: 1, 32>}, {transform_indices = @transform_4, window_bounds = array<i64: 16, 32>}]} {
    %c0 = arith.constant 0 : index
    %c0_0 = arith.constant 0 : index
    %0 = vector.load %arg1[%c0, %c0_0] : memref<16x32xf32, #tpu.memory_space<vmem>>, vector<16x32xf32>
    %c0_1 = arith.constant 0 : index
    %c0_2 = arith.constant 0 : index
    %1 = vector.load %arg2[%c0_1, %c0_2] : memref<16x32xf32, #tpu.memory_space<vmem>>, vector<16x32xf32>
    %c0_3 = arith.constant 0 : index
    %c0_4 = arith.constant 0 : index
    %2 = vector.load %arg3[%c0_3, %c0_4] : memref<1x32xf32, #tpu.memory_space<vmem>>, vector<1x32xf32>
    %c0_5 = arith.constant 0 : index
    %c0_6 = arith.constant 0 : index
    %3 = vector.load %arg4[%c0_5, %c0_6] : memref<1x32xf32, #tpu.memory_space<vmem>>, vector<1x32xf32>
    %cst = arith.constant dense<0.000000e+00> : vector<16xf32>
    %4 = vector.multi_reduction <add>, %0, %cst [1] : vector<16x32xf32> to vector<16xf32>
    %5 = vector.shape_cast %4 : vector<16xf32> to vector<16x1xf32>
    %cst_7 = arith.constant 3.125000e-02 : f32
    %6 = vector.broadcast %cst_7 : f32 to vector<16x1xf32>
    %7 = arith.mulf %5, %6 : vector<16x1xf32>
    %8 = vector.broadcast %7 : vector<16x1xf32> to vector<16x32xf32>
    %9 = arith.subf %0, %8 : vector<16x32xf32>
    %10 = arith.mulf %9, %9 : vector<16x32xf32>
    %cst_8 = arith.constant dense<0.000000e+00> : vector<16xf32>
    %11 = vector.multi_reduction <add>, %10, %cst_8 [1] : vector<16x32xf32> to vector<16xf32>
    %12 = vector.shape_cast %11 : vector<16xf32> to vector<16x1xf32>
    %cst_9 = arith.constant 0.0322580636 : f32
    %13 = vector.broadcast %cst_9 : f32 to vector<16x1xf32>
    %14 = arith.mulf %12, %13 : vector<16x1xf32>
    %15 = math.sqrt %14 : vector<16x1xf32>
    %cst_10 = arith.constant 9.99999974E-6 : f32
    %16 = vector.broadcast %cst_10 : f32 to vector<16x1xf32>
    %17 = arith.addf %15, %16 : vector<16x1xf32>
    %cst_11 = arith.constant 1.000000e+00 : f32
    %18 = vector.broadcast %cst_11 : f32 to vector<16x1xf32>
    %19 = arith.divf %18, %17 : vector<16x1xf32>
    %20 = vector.broadcast %19 : vector<16x1xf32> to vector<16x32xf32>
    %21 = arith.mulf %9, %20 : vector<16x32xf32>
    %22 = vector.broadcast %2 : vector<1x32xf32> to vector<16x32xf32>
    %23 = arith.mulf %21, %22 : vector<16x32xf32>
    %24 = vector.broadcast %3 : vector<1x32xf32> to vector<16x32xf32>
    %25 = arith.addf %23, %24 : vector<16x32xf32>
    %26 = arith.addf %25, %1 : vector<16x32xf32>
    %c0_12 = arith.constant 0 : index
    %c0_13 = arith.constant 0 : index
    %27 = vector.load %arg5[%c0_12, %c0_13] : memref<16x32xf32, #tpu.memory_space<vmem>>, vector<16x32xf32>
    tpu.vector_store %arg5[%c0_12, %c0_13], %26 {strides = array<i32>} : memref<16x32xf32, #tpu.memory_space<vmem>>, vector<16x32xf32>,
    return
  }
  func.func @transform_0(%arg0: i32) -> (i32, i32) {
    %c0_i32 = arith.constant 0 : i32
    %c0_i32_0 = arith.constant 0 : i32
    return %arg0, %c0_i32 : i32, i32
  }
  func.func @transform_1(%arg0: i32) -> (i32, i32) {
    %c0_i32 = arith.constant 0 : i32
    %c0_i32_0 = arith.constant 0 : i32
    return %arg0, %c0_i32 : i32, i32
  }
  func.func @transform_2(%arg0: i32) -> (i32, i32) {
    %c0_i32 = arith.constant 0 : i32
    %c0_i32_0 = arith.constant 0 : i32
    %c0_i32_1 = arith.constant 0 : i32
    return %c0_i32, %c0_i32_0 : i32, i32
  }
  func.func @transform_3(%arg0: i32) -> (i32, i32) {
    %c0_i32 = arith.constant 0 : i32
    %c0_i32_0 = arith.constant 0 : i32
    %c0_i32_1 = arith.constant 0 : i32
    return %c0_i32, %c0_i32_0 : i32, i32
  }
  func.func @transform_4(%arg0: i32) -> (i32, i32) {
    %c0_i32 = arith.constant 0 : i32
    %c0_i32_0 = arith.constant 0 : i32
    return %arg0, %c0_i32 : i32, i32
  }
}

</mosaic_0001>

<bundles_post_ra>
// kernel: tpu_custom_call.1
= control target key start
LH: loop header
LB: loop body
LE: loop exit
PB: predicated region body
PF: predicated region fallthrough
CT: control target
= control target key end

     0   :  { %9 = vsyncpa [#allocation3], 0  ;;  %s274_s0 = inlined_call_operand.hbm [shape: f32[16,32], index: 0, kind: input, shape index: {}]   ;;  %s275_s1 = inlined_call_operand.hbm [shape: f32[16,32], index: 1, kind: input, shape index: {}]   ;;  %s276_s2 = inlined_call_operand.vmem [shape: f32[1,32], index: 2, kind: input, shape index: {}]   ;;  %s277_s3 = inlined_call_operand.vmem [shape: f32[1,32], index: 3, kind: input, shape index: {}]   ;;  %s278_s4 = inlined_call_operand.hbm [shape: f32[16,32], index: 4, kind: output, shape index: {}]  }
   0x1   :  { %10 = vsyncpa [#allocation6], 0 }
   0x2   :  { %11 = vsyncpa [#allocation4], 0  ;;  %s214_s15 = smov [#allocation2]  }
   0x3   :  { %s17_s16 = sshll.u32 %s214_s15, 4  ;;  %s18_s16 = int_to_ptr.vmem [resolvable:$true] %s17_s16 }
   0x4   :  { %s156_s17 = scalar_lea.vmem %s18_s16, 256  ;;  %p161_p1 = scmp.lt.s32.totalorder %s18_s16, %s18_s16 }
   0x5   :  { %p157_p0 = scmp.ne.s32.totalorder %s18_s16, %s156_s17  ;;  %p162_p2 = scmp.lt.s32.totalorder %s156_s17, %s156_s17 }
   0x7   :  { %p163_p3 = por %p162_p2, %p161_p1 }
   0x9   :  { %p164_p4 = pnand %p163_p3, %p157_p0 }
   0xb   :  { %167 = shalt.err (!%p164_p4)
}
   0xc   :  { %s215_s18 = smov 128   ;;  %s216_s19 = smov 8  }
   0xd   :  { %23 = dma.hbm_to_vmem [thread:$0]  %s274_s0, 256, %s18_s16, [#allocation3], %s215_s18, %s215_s18, %s216_s19  }
   0xe   :  { %s217_s22 = smov [#allocation5]  }
   0xf   :  { %s29_s23 = sshll.u32 %s217_s22, 4  ;;  %s30_s23 = int_to_ptr.vmem [resolvable:$true] %s29_s23 }
  0x10   :  { %s176_s24 = scalar_lea.vmem %s30_s23, 256  ;;  %p181_p6 = scmp.lt.s32.totalorder %s30_s23, %s30_s23 }
  0x11   :  { %p177_p5 = scmp.ne.s32.totalorder %s30_s23, %s176_s24  ;;  %p182_p7 = scmp.lt.s32.totalorder %s176_s24, %s176_s24 }
  0x13   :  { %p183_p8 = por %p182_p7, %p181_p6 }
  0x15   :  { %p184_p9 = pnand %p183_p8, %p177_p5 }
  0x17   :  { %187 = shalt.err (!%p184_p9)
}
  0x18   :  { %35 = dma.hbm_to_vmem [thread:$0]  %s275_s1, 256, %s30_s23, [#allocation6], %s215_s18, %s215_s18, %s216_s19  }
  0x19   :  { %208 = dma.done.wait [#allocation3], 256  }
  0x1a   :  { %209 = vsyncadd [#allocation3], 4294967040 }
  0x1b   :  { %210 = dma.done.wait [#allocation6], 256  }
  0x1c   :  { %211 = vsyncadd [#allocation6], 4294967040  ;;  %vm52_vm0 = vcmask 261120   ;;  %v46_v0 = vld [vmem:[#allocation2] sm:$0xff]  ;;  %v47_v1 = vld [vmem:[#allocation2 + $0x8] sm:$0xff]  ;;  %s218_s29 = smov [#allocation7]  }
  0x1d   :  { %v53_v2 = vsel %vm52_vm0, %v46_v0, 0.0  ;;  %v56_v3 = vsel %vm52_vm0, %v47_v1, 0.0  ;;  %v133_v31 = vld [vmem:[%s276_s2] ss:$0 sm:$0xff]  ;;  %v48_v36 = vld [vmem:[#allocation5] sm:$0xff]  ;;  %v49_v41 = vld [vmem:[#allocation5 + $0x8] sm:$0xff] }
  0x1e   :  { %54 = vadd.xlane.f32.xlu0 %v53_v2  ;;  %v134_v33 = vld [vmem:[%s277_s3] ss:$0 sm:$0xff]  ;;  %s120_s30 = sshll.u32 %s218_s29, 4  ;;  %s121_s30 = int_to_ptr.vmem [resolvable:$true] %s120_s30 }
  0x1f   :  { %s188_s2 = scalar_lea.vmem %s121_s30, 256  ;;  %p193_p11 = scmp.lt.s32.totalorder %s121_s30, %s121_s30 }
  0x20   :  { %p189_p10 = scmp.ne.s32.totalorder %s121_s30, %s188_s2  ;;  %p194_p12 = scmp.lt.s32.totalorder %s188_s2, %s188_s2 }
  0x22   :  { %57 = vadd.xlane.f32.xlu0 %v56_v3  ;;  %p195_p13 = por %p194_p12, %p193_p11 }
  0x24   :  { %p196_p0 = pnand %p195_p13, %p189_p10 }
  0xa7   :  { %v55_v4 = vpop.xlane.xlu0 %54 }
  0xa8   :  { %v59_v5 = vmul.f32 0.03125, %v55_v4 }
  0xaa   :  { %v61_v6 = vsub.f32 %v46_v0, %v59_v5 }
  0xab   :  { %v58_v7 = vpop.xlane.xlu0 %57 }
  0xac   :  { %v60_v8 = vmul.f32 0.03125, %v58_v7  ;;  %v63_v9 = vmul.f32 %v61_v6, %v61_v6 }
  0xae   :  { %v62_v10 = vsub.f32 %v47_v1, %v60_v8  ;;  %v65_v11 = vsel %vm52_vm0, %v63_v9, 0.0 }
  0xaf   :  { %66 = vadd.xlane.f32.xlu1 %v65_v11 }
  0xb0   :  { %v64_v12 = vmul.f32 %v62_v10, %v62_v10 }
  0xb2   :  { %v68_v13 = vsel %vm52_vm0, %v64_v12, 0.0 }
  0xb3   :  { %69 = vadd.xlane.f32.xlu1 %v68_v13 }
 0x138   :  { %v67_v14 = vpop.xlane.xlu1 %66 }
 0x139   :  { %v71_v15 = vmul.f32 0.032258064, %v67_v14 }
 0x13b   :  { %140 = vrsqrt.f32 %v71_v15  ;;  %vm75_vm1 = vcmp.eq.f32.partialorder %v71_v15, inf  ;;  %v78_v20 = vand.u32 2147483648, %v71_v15  ;;  %vm77_vm2 = vcmp.eq.f32.partialorder %v71_v15, 0.0 }
 0x13c   :  { %v70_v16 = vpop.xlane.xlu1 %69 }
 0x13d   :  { %v72_v17 = vmul.f32 0.032258064, %v70_v16 }
 0x13f   :  { %142 = vrsqrt.f32 %v72_v17  ;;  %vm82_vm3 = vcmp.eq.f32.partialorder %v72_v17, inf  ;;  %v85_v26 = vand.u32 2147483648, %v72_v17  ;;  %vm84_vm4 = vcmp.eq.f32.partialorder %v72_v17, 0.0 }
 0x148   :  { %v141_v18 = vpop.eup %140 }
 0x149   :  { %v74_v19 = vmul.f32 %v141_v18, %v71_v15 }
 0x14b   :  { %v76_v21 = vsel %vm75_vm1, %v71_v15, %v74_v19 }
 0x14c   :  { %v143_v22 = vpop.eup %142  ;;  %v79_v23 = vsel %vm77_vm2, %v78_v20, %v76_v21 }
 0x14d   :  { %v87_v24 = vadd.f32 1e-05, %v79_v23  ;;  %v81_v25 = vmul.f32 %v143_v22, %v72_v17 }
 0x14f   :  { %144 = vrcp.f32 %v87_v24  ;;  %v83_v27 = vsel %vm82_vm3, %v72_v17, %v81_v25 }
 0x150   :  { %v86_v28 = vsel %vm84_vm4, %v85_v26, %v83_v27 }
 0x151   :  { %v88_v29 = vadd.f32 1e-05, %v86_v28 }
 0x153   :  { %146 = vrcp.f32 %v88_v29 }
 0x15c   :  { %v145_v30 = vpop.eup %144 }
 0x15d   :  { %v93_v32 = vmul.f32 %v145_v30, %v61_v6 }
 0x15f   :  { %v101_v34 = vmul.f32 %v133_v31, %v93_v32 }
 0x160   :  { %v147_v35 = vpop.eup %146 }
 0x161   :  { %v94_v37 = vmul.f32 %v147_v35, %v62_v10  ;;  %v109_v38 = vadd.f32 %v134_v33, %v101_v34 }
 0x163   :  { %v102_v39 = vmul.f32 %v133_v31, %v94_v37  ;;  %v111_v40 = vadd.f32 %v109_v38, %v48_v36 }
 0x165   :  { %v110_v42 = vadd.f32 %v134_v33, %v102_v39  ;;  %113 = vst.msk [vmem:[#allocation7] sm:$0xff] %vm52_vm0, %v111_v40 }
 0x167   :  { %v112_v43 = vadd.f32 %v110_v42, %v49_v41 }
 0x169   :  { %114 = vst.msk [vmem:[#allocation7 + $0x8] sm:$0xff] %vm52_vm0, %v112_v43 }
 0x16a   :  { %199 = shalt.err (!%p196_p0)
}
 0x16b   :  { %126 = dma.vmem_to_hbm [thread:$0]  %s121_s30, 256, %s278_s4, [#allocation4], %s215_s18, %s215_s18, %s216_s19  }
 0x16c   :  { %212 = dma.done.wait [#allocation4], 256  }
 0x16d   :  { %213 = vsyncadd [#allocation4], 4294967040 }
 0x16e   :  { %130 = vsyncpa [#allocation3], 1 }
 0x16f   :  { %131 = vsyncpa [#allocation6], 1 }
 0x170   :  { %132 = vsyncpa [#allocation4], 1 }

</bundles_post_ra>
